<compile_context>
chip_gen: v7x
topology: tpu7x:2x2x1
jax: 0.10.0
libtpu: 0.0.40
codegen_flags: <defaults>
</compile_context>

<pallas_src>
import jax
import jax.numpy as jnp
from jax.experimental import pallas as pl
from jax.experimental.pallas import tpu as pltpu


def _round_up(n: int, m: int) -> int:
    return ((n + m - 1) // m) * m


def neuronbud_kernel(x_ref, w0_ref, w1_ref, w2_ref, b_ref, out_ref):
    h0 = w0_ref.shape[1]
    h1 = w1_ref.shape[1]
    mxu_dtype = w0_ref.dtype

    biases = b_ref[...]                       # (1, h0 + h1 + size_out), f32
    b0 = biases[:, :h0]
    b1 = biases[:, h0:h0 + h1]
    b2 = biases[:, h0 + h1:]

    # Layer 0 (the 1/size_in scale is already folded into w0 on the host).
    x = x_ref[...].astype(mxu_dtype)
    h = jnp.dot(x, w0_ref[...], preferred_element_type=jnp.float32) + b0
    h = jnp.maximum(h, 0.0)                   # f32 elementwise (v5e-safe)

    # Layer 1
    h = jnp.dot(h.astype(mxu_dtype), w1_ref[...],
                preferred_element_type=jnp.float32) + b1
    h = jnp.maximum(h, 0.0)

    # Layer 2 (no activation after the final layer)
    out = jnp.dot(h.astype(mxu_dtype), w2_ref[...],
                  preferred_element_type=jnp.float32) + b2
    out_ref[...] = out.astype(out_ref.dtype)


def prepare_params(scale, linears, mxu_dtype=jnp.bfloat16):
    """One-time host-side layout: fold scale into W0, transpose weights to
    (in, out), cast MXU operands to bf16, pack the biases into one buffer."""
    (w0, b0), (w1, b1), (w2, b2) = linears
    w0t = (w0.astype(jnp.float32).T * scale.reshape(-1, 1)).astype(mxu_dtype)
    w1t = w1.astype(jnp.float32).T.astype(mxu_dtype)
    w2t = w2.astype(jnp.float32).T.astype(mxu_dtype)
    b_packed = jnp.concatenate([b0, b1, b2]).reshape(1, -1).astype(jnp.float32)
    return w0t, w1t, w2t, b_packed


def neuron_bud_forward(x, w0t, w1t, w2t, b_packed, *, tile_b=512):
    """x: (B, size_in) f32.  B may be many stacked rows / many fused buds —
    one pallas_call amortizes launch + DMA overhead over all of them."""
    B, size_in = x.shape
    h0, h1 = w0t.shape[1], w1t.shape[1]
    size_out = w2t.shape[1]

    tile_b = min(tile_b, _round_up(B, 8))
    b_pad = _round_up(B, tile_b)
    x = x.astype(jnp.float32)
    if b_pad != B:
        x = jnp.pad(x, ((0, b_pad - B), (0, 0)))
    grid = (b_pad // tile_b,)

    flops = 2 * b_pad * (size_in * h0 + h0 * h1 + h1 * size_out)
    bytes_accessed = (
        b_pad * size_in * 4
        + (size_in * h0 + h0 * h1 + h1 * size_out) * w0t.dtype.itemsize
        + b_packed.size * 4
        + b_pad * size_out * 4)

    out = pl.pallas_call(
        neuronbud_kernel,
        out_shape=jax.ShapeDtypeStruct((b_pad, size_out), jnp.float32),
        grid=grid,
        in_specs=[
            # activations: tiled over the batch grid
            pl.BlockSpec((tile_b, size_in), lambda i: (i, 0)),
            # weights / packed biases: constant index_map -> fetched once,
            # VMEM-resident for the whole grid
            pl.BlockSpec((size_in, h0), lambda i: (0, 0)),
            pl.BlockSpec((h0, h1), lambda i: (0, 0)),
            pl.BlockSpec((h1, size_out), lambda i: (0, 0)),
            pl.BlockSpec((1, h0 + h1 + size_out), lambda i: (0, 0)),
        ],
        out_specs=pl.BlockSpec((tile_b, size_out), lambda i: (i, 0)),
        compiler_params=pltpu.CompilerParams(
            dimension_semantics=("parallel",)),
        cost_estimate=pl.CostEstimate(
            flops=flops, transcendentals=0, bytes_accessed=bytes_accessed),
    )(x, w0t, w1t, w2t, b_packed)

    return out[:B] if b_pad != B else out


def init_linear(key, size_in, size_out):
    """Deterministic nn.Linear-style init: U(-1/sqrt(in), 1/sqrt(in))."""
    kw, kb = jax.random.split(key)
    bound = 1.0 / (size_in ** 0.5)
    W = jax.random.uniform(kw, (size_out, size_in), jnp.float32, -bound, bound)
    b = jax.random.uniform(kb, (size_out,), jnp.float32, -bound, bound)
    return W, b


def reference_forward(x, w0t, w1t, w2t, b_packed):
    """Plain-JAX implementation of the exact kernel numerics
    (bf16 MXU operands, f32 accumulation / bias / ReLU)."""
    h0, h1 = w0t.shape[1], w1t.shape[1]
    b0 = b_packed[:, :h0]
    b1 = b_packed[:, h0:h0 + h1]
    b2 = b_packed[:, h0 + h1:]
    m = w0t.dtype
    h = jnp.dot(x.astype(m), w0t, preferred_element_type=jnp.float32) + b0
    h = jnp.maximum(h, 0.0)
    h = jnp.dot(h.astype(m), w1t, preferred_element_type=jnp.float32) + b1
    h = jnp.maximum(h, 0.0)
    return jnp.dot(h.astype(m), w2t, preferred_element_type=jnp.float32) + b2


def reference_forward_f32(x, scale, linears):
    """Exact PyTorch fresh-module semantics in full f32."""
    (w0, b0), (w1, b1), (w2, b2) = linears
    h = x * scale
    h = h @ w0.T + b0
    h = jnp.maximum(h, 0.0)
    h = h @ w1.T + b1
    h = jnp.maximum(h, 0.0)
    return h @ w2.T + b2


if __name__ == "__main__":
    # NeuronBud(size_in=4, size_out=8, layers=[32, 32], activation='relu')
    batch, size_in, size_out = 2, 4, 8
    layers = [32, 32]

    key = jax.random.PRNGKey(0)
    kx, k0, k1, k2 = jax.random.split(key, 4)

    x = jax.random.normal(kx, (batch, size_in), jnp.float32)

    # self.weight = Parameter(torch.ones(1, size_in) / size_in)
    scale = jnp.ones((1, size_in), jnp.float32) / size_in

    linears = [
        init_linear(k0, size_in, layers[0]),
        init_linear(k1, layers[0], layers[1]),
        init_linear(k2, layers[1], size_out),
    ]

    # One-time parameter layout (scale fold, transposes, bias packing, bf16
    # cast of MXU operands) — NOT repeated per forward call.
    params = prepare_params(scale, linears, mxu_dtype=jnp.bfloat16)

    # TODO(synk): training-time state (lipschitz window caching, bud growth,
    # saturation masking) is stateful optimizer logic and is a no-op in the
    # fresh-module forward pass, so it is not part of the kernel.

    fwd = jax.jit(neuron_bud_forward)
    out = jax.block_until_ready(fwd(x, *params))
    assert out.shape == (batch, size_out)

    # Tight check against a plain-JAX implementation of the same numerics.
    ref = reference_forward(x, *params)
    assert jnp.allclose(out, ref, rtol=1e-3, atol=1e-3), "mismatch vs matched reference"

    # Loose sanity check against full-f32 PyTorch semantics (only difference
    # is bf16 rounding of the matmul operands).
    ref_f32 = reference_forward_f32(x, scale, linears)
    assert jnp.allclose(out, ref_f32, rtol=1e-1, atol=1e-1), "mismatch vs f32 reference"

    print("KERNEL_OK")
</pallas_src>

<mosaic_0001>
module attributes {stable_mosaic.version = 11 : i64} {
  func.func @neuronbud_kernel(%arg0: i32, %arg1: memref<8x4xf32, #tpu.memory_space<vmem>>, %arg2: memref<4x32xbf16, #tpu.memory_space<vmem>>, %arg3: memref<32x32xbf16, #tpu.memory_space<vmem>>, %arg4: memref<32x8xbf16, #tpu.memory_space<vmem>>, %arg5: memref<1x72xf32, #tpu.memory_space<vmem>>, %arg6: memref<8x8xf32, #tpu.memory_space<vmem>>) attributes {dimension_semantics = [#tpu.dimension_semantics<parallel>], iteration_bounds = array<i64: 1>, scalar_prefetch = 0 : i64, scratch_operands = 0 : i64, tpu.core_type = #tpu.core_type<tc>, window_params = [{transform_indices = @transform_0, window_bounds = array<i64: 8, 4>}, {pipeline_mode = #tpu.pipeline_mode<synchronous>, transform_indices = @transform_1, window_bounds = array<i64: 4, 32>}, {pipeline_mode = #tpu.pipeline_mode<synchronous>, transform_indices = @transform_2, window_bounds = array<i64: 32, 32>}, {pipeline_mode = #tpu.pipeline_mode<synchronous>, transform_indices = @transform_3, window_bounds = array<i64: 32, 8>}, {pipeline_mode = #tpu.pipeline_mode<synchronous>, transform_indices = @transform_4, window_bounds = array<i64: 1, 72>}, {transform_indices = @transform_5, window_bounds = array<i64: 8, 8>}]} {
    %c0 = arith.constant 0 : index
    %c0_0 = arith.constant 0 : index
    %0 = vector.load %arg5[%c0, %c0_0] : memref<1x72xf32, #tpu.memory_space<vmem>>, vector<1x72xf32>
    %1 = vector.extract_strided_slice %0 {offsets = [0, 0], sizes = [1, 32], strides = [1, 1]} : vector<1x72xf32> to vector<1x32xf32>
    %2 = vector.extract_strided_slice %0 {offsets = [0, 32], sizes = [1, 32], strides = [1, 1]} : vector<1x72xf32> to vector<1x32xf32>
    %3 = vector.extract_strided_slice %0 {offsets = [0, 64], sizes = [1, 8], strides = [1, 1]} : vector<1x72xf32> to vector<1x8xf32>
    %c0_1 = arith.constant 0 : index
    %c0_2 = arith.constant 0 : index
    %4 = vector.load %arg1[%c0_1, %c0_2] : memref<8x4xf32, #tpu.memory_space<vmem>>, vector<8x4xf32>
    %5 = arith.truncf %4 : vector<8x4xf32> to vector<8x4xbf16>
    %c0_3 = arith.constant 0 : index
    %c0_4 = arith.constant 0 : index
    %6 = vector.load %arg2[%c0_3, %c0_4] : memref<4x32xbf16, #tpu.memory_space<vmem>>, vector<4x32xbf16>
    %cst = arith.constant dense<0.000000e+00> : vector<8x32xf32>
    %7 = tpu.matmul %5, %6, %cst {dimension_numbers = #tpu.dot_dimension_numbers<[1], [0], [0], [1], [0, 0, 1, 1], [], []>} : vector<8x4xbf16>, vector<4x32xbf16>, vector<8x32xf32> -> vector<8x32xf32>
    %8 = vector.broadcast %1 : vector<1x32xf32> to vector<8x32xf32>
    %9 = arith.addf %7, %8 : vector<8x32xf32>
    %cst_5 = arith.constant 0.000000e+00 : f32
    %10 = vector.broadcast %cst_5 : f32 to vector<8x32xf32>
    %11 = arith.maximumf %9, %10 : vector<8x32xf32>
    %12 = arith.truncf %11 : vector<8x32xf32> to vector<8x32xbf16>
    %c0_6 = arith.constant 0 : index
    %c0_7 = arith.constant 0 : index
    %13 = vector.load %arg3[%c0_6, %c0_7] : memref<32x32xbf16, #tpu.memory_space<vmem>>, vector<32x32xbf16>
    %cst_8 = arith.constant dense<0.000000e+00> : vector<8x32xf32>
    %14 = tpu.matmul %12, %13, %cst_8 {dimension_numbers = #tpu.dot_dimension_numbers<[1], [0], [0], [1], [0, 0, 1, 1], [], []>} : vector<8x32xbf16>, vector<32x32xbf16>, vector<8x32xf32> -> vector<8x32xf32>
    %15 = vector.broadcast %2 : vector<1x32xf32> to vector<8x32xf32>
    %16 = arith.addf %14, %15 : vector<8x32xf32>
    %cst_9 = arith.constant 0.000000e+00 : f32
    %17 = vector.broadcast %cst_9 : f32 to vector<8x32xf32>
    %18 = arith.maximumf %16, %17 : vector<8x32xf32>
    %19 = arith.truncf %18 : vector<8x32xf32> to vector<8x32xbf16>
    %c0_10 = arith.constant 0 : index
    %c0_11 = arith.constant 0 : index
    %20 = vector.load %arg4[%c0_10, %c0_11] : memref<32x8xbf16, #tpu.memory_space<vmem>>, vector<32x8xbf16>
    %cst_12 = arith.constant dense<0.000000e+00> : vector<8x8xf32>
    %21 = tpu.matmul %19, %20, %cst_12 {dimension_numbers = #tpu.dot_dimension_numbers<[1], [0], [0], [1], [0, 0, 1, 1], [], []>} : vector<8x32xbf16>, vector<32x8xbf16>, vector<8x8xf32> -> vector<8x8xf32>
    %22 = vector.broadcast %3 : vector<1x8xf32> to vector<8x8xf32>
    %23 = arith.addf %21, %22 : vector<8x8xf32>
    %c0_13 = arith.constant 0 : index
    %c0_14 = arith.constant 0 : index
    %24 = vector.load %arg6[%c0_13, %c0_14] : memref<8x8xf32, #tpu.memory_space<vmem>>, vector<8x8xf32>
    tpu.vector_store %arg6[%c0_13, %c0_14], %23 {strides = array<i32>} : memref<8x8xf32, #tpu.memory_space<vmem>>, vector<8x8xf32>,
    return
  }
  func.func @transform_0(%arg0: i32) -> (i32, i32) {
    %c0_i32 = arith.constant 0 : i32
    %c0_i32_0 = arith.constant 0 : i32
    return %arg0, %c0_i32 : i32, i32
  }
  func.func @transform_1(%arg0: i32) -> (i32, i32) {
    %c0_i32 = arith.constant 0 : i32
    %c0_i32_0 = arith.constant 0 : i32
    %c0_i32_1 = arith.constant 0 : i32
    return %c0_i32, %c0_i32_0 : i32, i32
  }
  func.func @transform_2(%arg0: i32) -> (i32, i32) {
    %c0_i32 = arith.constant 0 : i32
    %c0_i32_0 = arith.constant 0 : i32
    %c0_i32_1 = arith.constant 0 : i32
    return %c0_i32, %c0_i32_0 : i32, i32
  }
  func.func @transform_3(%arg0: i32) -> (i32, i32) {
    %c0_i32 = arith.constant 0 : i32
    %c0_i32_0 = arith.constant 0 : i32
    %c0_i32_1 = arith.constant 0 : i32
    return %c0_i32, %c0_i32_0 : i32, i32
  }
  func.func @transform_4(%arg0: i32) -> (i32, i32) {
    %c0_i32 = arith.constant 0 : i32
    %c0_i32_0 = arith.constant 0 : i32
    %c0_i32_1 = arith.constant 0 : i32
    return %c0_i32, %c0_i32_0 : i32, i32
  }
  func.func @transform_5(%arg0: i32) -> (i32, i32) {
    %c0_i32 = arith.constant 0 : i32
    %c0_i32_0 = arith.constant 0 : i32
    return %arg0, %c0_i32 : i32, i32
  }
}

</mosaic_0001>

<bundles_post_ra>
// kernel: neuron_bud_forward.1
= control target key start
LH: loop header
LB: loop body
LE: loop exit
PB: predicated region body
PF: predicated region fallthrough
CT: control target
= control target key end

     0   :  { %vm35_vm0 = vcmask 1041408   ;;  %v260_v0 = vmov 0.0   ;;  %vm261_vm1 = vmmov 0   ;;  %vm31_vm2 = vcmask 31744   ;;  %s262_s26 = smov 96   ;;  %s318_s1 = inlined_call_operand.vmem [shape: bf16[4,32], index: 1, kind: input, shape index: {}]   ;;  %s319_s0 = inlined_call_operand.vmem [shape: f32[8,4], index: 0, kind: input, shape index: {}]   ;;  %s320_s2 = inlined_call_operand.vmem [shape: bf16[32,32], index: 2, kind: input, shape index: {}]   ;;  %s321_s4 = inlined_call_operand.vmem [shape: f32[1,72], index: 4, kind: input, shape index: {}]   ;;  %s322_s3 = inlined_call_operand.vmem [shape: bf16[32,8], index: 3, kind: input, shape index: {}]   ;;  %s323_s5 = inlined_call_operand.vmem [shape: f32[8,8], index: 5, kind: output, shape index: {}]  }
   0x1   :  { %230 = vmatprep.subr.bf16.mxu0 %v260_v0  ;;  %v24_v1 = vld [vmem:[%s318_s1] sm:$0x3]  ;;  %232 = vmatprep.mubr.msk.bf16.mxu0 %vm261_vm1, %v260_v0  ;;  %v257_v6 = vld [vmem:[%s320_s2 + $0x8] sm:$0xff]   ;;  %vm100_vm3 = vcmask 261120   ;;  %vm208_vm4 = vcmask 64512  }
   0x2   :  { %v22_v2 = vld [vmem:[%s319_s0] sm:$0xff]  ;;  %v37_v3 = vsel %vm35_vm0, %v24_v1, 0  ;;  %236 = vmatprep.subr.bf16.mxu1 %v260_v0  ;;  %240 = vmatprep.mubr.msk.bf16.mxu1 %vm261_vm1, %v260_v0  ;;  %v259_v16 = vld [vmem:[%s322_s3 + $0x8] sm:$0xff]  }
   0x3   :  { %v23_v4 = vpack.c.bf16 %v22_v2, %v22_v2  ;;  %231 = vmatpush3.bf16.msra.mxu0 %v37_v3  ;;  %v256_v5 = vld [vmem:[%s320_s2] sm:$0xff]  }
   0x4   :  { %244 = vmatprep.subr.bf16.mxu0 %v260_v0  ;;  %237 = vmatpush3.bf16.msra.mxu1 %v256_v5  ;;  %v214_v7 = vld [vmem:[%s321_s4] ss:$0 sm:$0xff]  ;;  %s263_s4 = smov 64  }
   0x5   :  { %238 = vmatprep.subr.bf16.mxu1 %v260_v0  ;;  %97 = vrot.lane.b32.xlu0 %v214_v7, %s262_s26  ;;  %v258_v8 = vld [vmem:[%s322_s3] sm:$0xff]  }
   0x6   :  { %233 = vmatmul.mubr.msk.bf16.vlgmr.msra.gmra.mrb[0].mxu0 %vm31_vm2, %v23_v4 }
   0x7   :  { %248 = vmatprep.mubr.msk.bf16.mxu0 %vm261_vm1, %v260_v0  ;;  %245 = vmatpush3.bf16.msra.mxu0 %v258_v8 }
   0x8   :  { %239 = vmatpush3.bf16.msra.mxu1 %v257_v6  ;;  %246 = vmatprep.subr.bf16.mxu0 %v260_v0 }
   0x9   :  { %162 = vrot.lane.b32.xlu0 %v214_v7, %s263_s4 }
   0xb   :  { %247 = vmatpush3.bf16.msra.mxu0 %v259_v16 }
  0x77   :  { %v98_v17 = vpop.permute.xlu0 %97 }
  0x7b   :  { %v163_v25 = vpop.permute.xlu0 %162 }
  0xd9   :  { %v73_v9 = vpop.f32.mrb[0].mxu0 }
  0xda   :  { %v74_v10 = vadd.f32 %v214_v7, %v73_v9  ;;  %v234_v11 = vpop.f32.mrb[1].mxu0 }
  0xdb   :  { %v76_v12 = vpop.f32.mrb[2].mxu0 }
  0xdc   :  { %v79_v13 = vmax.f32 %v74_v10, 0.0  ;;  %v235_v14 = vpop.f32.mrb[3].mxu0 }
  0xde   :  { %v80_v15 = vpack.c.bf16 %v79_v13, %v79_v13 }
  0xe0   :  { %241 = vmatmul.mubr.msk.bf16.vlgmr.msra.gmra.mrb[0].mxu1 %vm100_vm3, %v80_v15 }
 0x1b3   :  { %v138_v18 = vpop.f32.mrb[0].mxu1 }
 0x1b4   :  { %v139_v19 = vadd.f32 %v138_v18, %v98_v17  ;;  %v242_v20 = vpop.f32.mrb[1].mxu1 }
 0x1b5   :  { %v141_v21 = vpop.f32.mrb[2].mxu1 }
 0x1b6   :  { %v144_v22 = vmax.f32 %v139_v19, 0.0  ;;  %v243_v23 = vpop.f32.mrb[3].mxu1 }
 0x1b8   :  { %v145_v24 = vpack.c.bf16 %v144_v22, %v144_v22 }
 0x1ba   :  { %249 = vmatmul.mubr.msk.bf16.vlgmr.msra.gmra.mrb[4].mxu0 %vm100_vm3, %v145_v24 }
 0x28d   :  { %v202_v26 = vpop.f32.mrb[4].mxu0 }
 0x28e   :  { %v203_v27 = vadd.f32 %v202_v26, %v163_v25  ;;  %v250_v28 = vpop.f32.mrb[5].mxu0 }
 0x28f   :  { %v205_v29 = vpop.f32.mrb[6].mxu0 }
 0x290   :  { %209 = vst.msk [vmem:[%s323_s5] sm:$0xff] %vm208_vm4, %v203_v27  ;;  %v251_v30 = vpop.f32.mrb[7].mxu0 }

</bundles_post_ra>
